<compile_context>
chip_gen: v7x
topology: tpu7x:2x2x1
jax: 0.10.0
libtpu: 0.0.40
codegen_flags: <defaults>
</compile_context>

<pallas_src>
import jax
import jax.numpy as jnp
from jax.experimental import pallas as pl
from jax.experimental.pallas import tpu as pltpu

MXU_ALIGN = 256  # v6e/v7x MXU is 256x256; also a valid 128-multiple for v5e.


def _round_up(x, m):
    return ((x + m - 1) // m) * m


def _vmem_limit_bytes():
    """Per-generation VMEM budget with headroom for compiler scratch."""
    cap = 64 * 1024 * 1024  # conservative fallback (v7x physical)
    try:
        info = pltpu.get_tpu_info()
        cap = int(getattr(info, "vmem_capacity_bytes", cap))
    except Exception:
        pass
    # 128 MiB chips (v5e/v6e) -> 112 MiB; 64 MiB chips (v7x) -> 48 MiB.
    return max(32 * 1024 * 1024, min(cap - 16 * 1024 * 1024, 112 * 1024 * 1024))


def linear_kernel(x_ref, w_ref, b_ref, o_ref):
    # x_ref: [Bt, E_p] (input dtype)     w_ref: [E_p, TN] bf16 (pre-transposed)
    # b_ref: [1, TN] f32                 o_ref: [Bt, TN]
    x = x_ref[...].astype(jnp.bfloat16)
    acc = jnp.dot(x, w_ref[...], preferred_element_type=jnp.float32)  # MXU
    acc = acc + b_ref[...]                                            # f32 VPU
    o_ref[...] = acc.astype(o_ref.dtype)


def simple_classifier_forward(x, weight, bias, dropout_p=0.0, *,
                              training=False, block_b=256, block_n=512):
    """x: [B, E], weight: [O, E] (PyTorch layout), bias: [O].

    Inference-mode dropout is identity (matches module.eval()).
    """
    if training and dropout_p > 0:
        # TODO(synk): in-kernel training dropout (prng_seed + stateful_bernoulli).
        raise NotImplementedError("training-mode dropout not implemented")

    B, E = x.shape
    O = weight.shape[0]

    # Tile/alignment plan (padding of params is a one-time init cost in prod).
    E_p = _round_up(E, MXU_ALIGN)
    O_p = _round_up(O, MXU_ALIGN)
    gran = 8 if x.dtype.itemsize >= 4 else 16          # bf16 packs 16 sublanes
    B_tile = min(_round_up(B, gran), _round_up(block_b, gran))
    B_p = _round_up(B, B_tile)
    TN = min(O_p, _round_up(block_n, MXU_ALIGN))

    x_p = x if (B_p == B and E_p == E) else jnp.pad(
        x, ((0, B_p - B), (0, E_p - E)))
    # One-time (param-init in production): pad, transpose to [E_p, O_p], bf16.
    w_t = jnp.pad(weight, ((0, O_p - O), (0, E_p - E))).T.astype(jnp.bfloat16)
    b_p = jnp.pad(bias, (0, O_p - O)).astype(jnp.float32).reshape(1, O_p)

    # O outer (each weight slice DMA'd once, TCs split on O), batch inner
    # (x tile stays resident across the inner loop).
    grid = (O_p // TN, B_p // B_tile)

    out = pl.pallas_call(
        linear_kernel,
        out_shape=jax.ShapeDtypeStruct((B_p, O_p), x.dtype),
        grid_spec=pltpu.PrefetchScalarGridSpec(
            num_scalar_prefetch=0,
            grid=grid,
            in_specs=[
                # x: constant along the O axis -> resident per batch tile.
                pl.BlockSpec((B_tile, E_p), lambda j, i: (i, 0)),
                # weight slice: changes with j -> double-buffered prefetch.
                pl.BlockSpec((E_p, TN), lambda j, i: (0, j)),
                # bias slice.
                pl.BlockSpec((1, TN), lambda j, i: (0, j)),
            ],
            out_specs=pl.BlockSpec((B_tile, TN), lambda j, i: (i, j)),
        ),
        compiler_params=pltpu.CompilerParams(
            dimension_semantics=("parallel", "parallel"),
            vmem_limit_bytes=_vmem_limit_bytes(),
        ),
    )(x_p, w_t, b_p)

    return out[:B, :O]


def init_params(key, embd_size, output_dim):
    """Deterministic init mimicking nn.Linear default (uniform +-1/sqrt(fan_in))."""
    k_w, k_b = jax.random.split(key)
    bound = 1.0 / (embd_size ** 0.5)
    weight = jax.random.uniform(k_w, (output_dim, embd_size),
                                minval=-bound, maxval=bound, dtype=jnp.float32)
    bias = jax.random.uniform(k_b, (output_dim,),
                              minval=-bound, maxval=bound, dtype=jnp.float32)
    return weight, bias


if __name__ == "__main__":
    key = jax.random.PRNGKey(0)
    k_x, k_p = jax.random.split(key)

    batch = 8
    embd_size = 32
    output_dim = 4
    dropout = 0.3  # only affects training mode; identity at inference

    x = jax.random.normal(k_x, (batch, embd_size), dtype=jnp.float32)
    weight, bias = init_params(k_p, embd_size, output_dim)

    out = simple_classifier_forward(x, weight, bias, dropout_p=dropout)
    out = jax.block_until_ready(out)
    assert out.shape == (batch, output_dim)

    # Reference 1: same bf16-operand / f32-accumulate recipe as the kernel.
    ref_bf16 = jnp.dot(x.astype(jnp.bfloat16),
                       weight.T.astype(jnp.bfloat16),
                       preferred_element_type=jnp.float32) + bias
    assert jnp.allclose(out, ref_bf16, atol=1e-3, rtol=1e-3)

    # Reference 2: full-f32 PyTorch-equivalent forward (bf16-level tolerance).
    ref_f32 = x @ weight.T + bias
    assert jnp.allclose(out, ref_f32, atol=3e-2, rtol=3e-2)

    print("KERNEL_OK")
</pallas_src>

<mosaic_0001>
module attributes {stable_mosaic.version = 11 : i64} {
  func.func @linear_kernel(%arg0: i32, %arg1: i32, %arg2: memref<8x256xf32, #tpu.memory_space<vmem>>, %arg3: memref<256x256xbf16, #tpu.memory_space<vmem>>, %arg4: memref<1x256xf32, #tpu.memory_space<vmem>>, %arg5: memref<8x256xf32, #tpu.memory_space<vmem>>) attributes {dimension_semantics = [#tpu.dimension_semantics<parallel>, #tpu.dimension_semantics<parallel>], iteration_bounds = array<i64: 1, 1>, scalar_prefetch = 0 : i64, scratch_operands = 0 : i64, tpu.core_type = #tpu.core_type<tc>, window_params = [{transform_indices = @transform_0, window_bounds = array<i64: 8, 256>}, {transform_indices = @transform_1, window_bounds = array<i64: 256, 256>}, {transform_indices = @transform_2, window_bounds = array<i64: 1, 256>}, {transform_indices = @transform_3, window_bounds = array<i64: 8, 256>}]} {
    %c0 = arith.constant 0 : index
    %c0_0 = arith.constant 0 : index
    %0 = vector.load %arg2[%c0, %c0_0] : memref<8x256xf32, #tpu.memory_space<vmem>>, vector<8x256xf32>
    %1 = arith.truncf %0 : vector<8x256xf32> to vector<8x256xbf16>
    %c0_1 = arith.constant 0 : index
    %c0_2 = arith.constant 0 : index
    %2 = vector.load %arg3[%c0_1, %c0_2] : memref<256x256xbf16, #tpu.memory_space<vmem>>, vector<256x256xbf16>
    %cst = arith.constant dense<0.000000e+00> : vector<8x256xf32>
    %3 = tpu.matmul %1, %2, %cst {dimension_numbers = #tpu.dot_dimension_numbers<[1], [0], [0], [1], [0, 0, 1, 1], [], []>} : vector<8x256xbf16>, vector<256x256xbf16>, vector<8x256xf32> -> vector<8x256xf32>
    %c0_3 = arith.constant 0 : index
    %c0_4 = arith.constant 0 : index
    %4 = vector.load %arg4[%c0_3, %c0_4] : memref<1x256xf32, #tpu.memory_space<vmem>>, vector<1x256xf32>
    %5 = vector.broadcast %4 : vector<1x256xf32> to vector<8x256xf32>
    %6 = arith.addf %3, %5 : vector<8x256xf32>
    %c0_5 = arith.constant 0 : index
    %c0_6 = arith.constant 0 : index
    %7 = vector.load %arg5[%c0_5, %c0_6] : memref<8x256xf32, #tpu.memory_space<vmem>>, vector<8x256xf32>
    tpu.vector_store %arg5[%c0_5, %c0_6], %6 {strides = array<i32>} : memref<8x256xf32, #tpu.memory_space<vmem>>, vector<8x256xf32>,
    return
  }
  func.func @transform_0(%arg0: i32, %arg1: i32) -> (i32, i32) {
    %c0_i32 = arith.constant 0 : i32
    %c0_i32_0 = arith.constant 0 : i32
    return %arg1, %c0_i32 : i32, i32
  }
  func.func @transform_1(%arg0: i32, %arg1: i32) -> (i32, i32) {
    %c0_i32 = arith.constant 0 : i32
    %c0_i32_0 = arith.constant 0 : i32
    return %c0_i32, %arg0 : i32, i32
  }
  func.func @transform_2(%arg0: i32, %arg1: i32) -> (i32, i32) {
    %c0_i32 = arith.constant 0 : i32
    %c0_i32_0 = arith.constant 0 : i32
    return %c0_i32, %arg0 : i32, i32
  }
  func.func @transform_3(%arg0: i32, %arg1: i32) -> (i32, i32) {
    %c0_i32 = arith.constant 0 : i32
    return %arg1, %arg0 : i32, i32
  }
}

</mosaic_0001>

<bundles_post_ra>
// kernel: tpu_custom_call.1
= control target key start
LH: loop header
LB: loop body
LE: loop exit
PB: predicated region body
PF: predicated region fallthrough
CT: control target
= control target key end

     0   :  { %8 = vsyncpa [#allocation3], 0  ;;  %s536_s0 = inlined_call_operand.hbm [shape: f32[8,256], index: 0, kind: input, shape index: {}]   ;;  %s537_s1 = inlined_call_operand.hbm [shape: bf16[256,256], index: 1, kind: input, shape index: {}]   ;;  %s538_s2 = inlined_call_operand.vmem [shape: f32[1,256], index: 2, kind: input, shape index: {}]   ;;  %s539_s3 = inlined_call_operand.hbm [shape: f32[8,256], index: 3, kind: output, shape index: {}]  }
   0x1   :  { %9 = vsyncpa [#allocation6], 0 }
   0x2   :  { %10 = vsyncpa [#allocation4], 0  ;;  %s465_s12 = smov [#allocation2]   ;;  %s466_s14 = smov [#allocation5]  }
   0x3   :  { %s17_s13 = sshll.u32 %s465_s12, 4  ;;  %s26_s15 = sshll.u32 %s466_s14, 4  ;;  %s18_s13 = int_to_ptr.vmem [resolvable:$true] %s17_s13  ;;  %s490_s15 = int_to_ptr.vmem [resolvable:$true] %s26_s15 }
   0x4   :  { %s393_s18 = scalar_lea.hbm %s536_s0, 256 }
   0x5   :  { %p394_p0 = scmp.ne.s32.totalorder %s536_s0, %s393_s18  ;;  %p397_p1 = scmp.lt.u32.totalorder %s393_s18, %s536_s0 }
   0x7   :  { %p399_p2 = pnand %p397_p1, %p394_p0 }
   0x9   :  { %402 = shalt.err (!%p399_p2)
}
   0xa   :  { %s403_s23 = scalar_lea.vmem %s18_s13, 256  ;;  %p408_p4 = scmp.lt.s32.totalorder %s18_s13, %s18_s13 }
   0xb   :  { %p404_p3 = scmp.ne.s32.totalorder %s18_s13, %s403_s23  ;;  %p409_p5 = scmp.lt.s32.totalorder %s403_s23, %s403_s23 }
   0xd   :  { %p410_p6 = por %p409_p5, %p408_p4 }
   0xf   :  { %p411_p7 = pnand %p410_p6, %p404_p3 }
  0x11   :  { %414 = shalt.err (!%p411_p7)
}
  0x12   :  { %20 = dma.hbm_to_vmem [thread:$0]  %s536_s0, 256, %s18_s13, [#allocation3]  }
  0x13   :  { %s415_s28 = scalar_lea.hbm %s537_s1, 4096 }
  0x14   :  { %p416_p8 = scmp.ne.s32.totalorder %s537_s1, %s415_s28  ;;  %p419_p9 = scmp.lt.u32.totalorder %s415_s28, %s537_s1 }
  0x16   :  { %p421_p10 = pnand %p419_p9, %p416_p8 }
  0x18   :  { %424 = shalt.err (!%p421_p10)
}
  0x19   :  { %s425_s6 = scalar_lea.vmem %s490_s15, 4096  ;;  %p430_p12 = scmp.lt.s32.totalorder %s490_s15, %s490_s15 }
  0x1a   :  { %p426_p11 = scmp.ne.s32.totalorder %s490_s15, %s425_s6  ;;  %p431_p13 = scmp.lt.s32.totalorder %s425_s6, %s425_s6 }
  0x1c   :  { %p432_p0 = por %p431_p13, %p430_p12 }
  0x1e   :  { %p433_p1 = pnand %p432_p0, %p426_p11 }
  0x20   :  { %436 = shalt.err (!%p433_p1)
}
  0x21   :  { %s467_s0 = smov 128   ;;  %s468_s7 = smov 8  }
  0x22   :  { %32 = dma.hbm_to_vmem [thread:$0]  %s537_s1, 4096, %s490_s15, [#allocation6], %s467_s0, %s467_s0, %s468_s7  }
  0x23   :  { %459 = dma.done.wait [#allocation3], 256  }
  0x24   :  { %460 = vsyncadd [#allocation3], 4294967040 }
  0x25   :  { %461 = dma.done.wait [#allocation6], 4096  }
  0x26   :  { %462 = vsyncadd [#allocation6], 4294963200  ;;  %v345_v0 = vld [vmem:[#allocation5 + $0x4] ss:$8 sps:$4 sm:$0xff]   ;;  %v347_v1 = vld [vmem:[#allocation5] ss:$8 sps:$4 sm:$0xff]   ;;  %v79_v36 = vlaneseq }
  0x27   :  { %249 = vmatprep.subr.bf16.mxu0 %v345_v0  ;;  %v348_v2 = vld [vmem:[#allocation5 + $0x14] ss:$8 sps:$4 sm:$0xff]   ;;  %v350_v3 = vld [vmem:[#allocation5 + $0x10] ss:$8 sps:$4 sm:$0xff]   ;;  %v351_v4 = vld [vmem:[#allocation5 + $0x24] ss:$8 sps:$4 sm:$0xff]  }
  0x28   :  { %250 = vmatpush1.bf16.msra.mxu0 %v347_v1  ;;  %v353_v5 = vld [vmem:[#allocation5 + $0x20] ss:$8 sps:$4 sm:$0xff]   ;;  %v354_v6 = vld [vmem:[#allocation5 + $0x34] ss:$8 sps:$4 sm:$0xff]   ;;  %v356_v7 = vld [vmem:[#allocation5 + $0x30] ss:$8 sps:$4 sm:$0xff]  }
  0x29   :  { %251 = vmatprep.subr.bf16.mxu0 %v348_v2  ;;  %v357_v8 = vld [vmem:[#allocation5 + $0x44] ss:$8 sps:$4 sm:$0xff]   ;;  %v359_v9 = vld [vmem:[#allocation5 + $0x40] ss:$8 sps:$4 sm:$0xff]   ;;  %v360_v10 = vld [vmem:[#allocation5 + $0x54] ss:$8 sps:$4 sm:$0xff]  }
  0x2a   :  { %v362_v11 = vld [vmem:[#allocation5 + $0x50] ss:$8 sps:$4 sm:$0xff]   ;;  %v363_v12 = vld [vmem:[#allocation5 + $0x64] ss:$8 sps:$4 sm:$0xff]   ;;  %v365_v15 = vld [vmem:[#allocation5 + $0x60] ss:$8 sps:$4 sm:$0xff]  }
  0x2b   :  { %v42_v13 = vld [vmem:[#allocation2 + $0x8] sm:$0xff]  ;;  %v369_v18 = vld [vmem:[#allocation5 + $0x84] ss:$8 sps:$4 sm:$0xff]   ;;  %v371_v19 = vld [vmem:[#allocation5 + $0x80] ss:$8 sps:$4 sm:$0xff]   ;;  %v80_v37 = vshrl.u32 %v79_v36, 7 }
  0x2c   :  { %252 = vmatpush1.bf16.msra.mxu0 %v350_v3  ;;  %v44_v14 = vpack.c.bf16 %v42_v13, %v42_v13  ;;  %v366_v16 = vld [vmem:[#allocation5 + $0x74] ss:$8 sps:$4 sm:$0xff]   ;;  %v368_v17 = vld [vmem:[#allocation5 + $0x70] ss:$8 sps:$4 sm:$0xff]   ;;  %v375_v22 = vld [vmem:[#allocation5 + $0xa4] ss:$8 sps:$4 sm:$0xff]  }
  0x2d   :  { %253 = vmatprep.subr.bf16.mxu0 %v351_v4  ;;  %v372_v20 = vld [vmem:[#allocation5 + $0x94] ss:$8 sps:$4 sm:$0xff]   ;;  %v374_v21 = vld [vmem:[#allocation5 + $0x90] ss:$8 sps:$4 sm:$0xff]   ;;  %v377_v23 = vld [vmem:[#allocation5 + $0xa0] ss:$8 sps:$4 sm:$0xff]  }
  0x2e   :  { %281 = vmatprep.mubr.bf16.mxu0 %v44_v14  ;;  %v378_v24 = vld [vmem:[#allocation5 + $0xb4] ss:$8 sps:$4 sm:$0xff]   ;;  %v380_v25 = vld [vmem:[#allocation5 + $0xb0] ss:$8 sps:$4 sm:$0xff]   ;;  %v381_v26 = vld [vmem:[#allocation5 + $0xc4] ss:$8 sps:$4 sm:$0xff]  }
  0x2f   :  { %v383_v27 = vld [vmem:[#allocation5 + $0xc0] ss:$8 sps:$4 sm:$0xff]   ;;  %v384_v28 = vld [vmem:[#allocation5 + $0xd4] ss:$8 sps:$4 sm:$0xff]   ;;  %v386_v29 = vld [vmem:[#allocation5 + $0xd0] ss:$8 sps:$4 sm:$0xff]  }
  0x30   :  { %254 = vmatpush1.bf16.msra.mxu0 %v353_v5  ;;  %v387_v30 = vld [vmem:[#allocation5 + $0xe4] ss:$8 sps:$4 sm:$0xff]   ;;  %v389_v31 = vld [vmem:[#allocation5 + $0xe0] ss:$8 sps:$4 sm:$0xff]   ;;  %v390_v32 = vld [vmem:[#allocation5 + $0xf4] ss:$8 sps:$4 sm:$0xff]  }
  0x31   :  { %255 = vmatprep.subr.bf16.mxu0 %v354_v6  ;;  %v392_v33 = vld [vmem:[#allocation5 + $0xf0] ss:$8 sps:$4 sm:$0xff]   ;;  %v81_v38 = vsub.s32 0, %v80_v37  ;;  %v85_v40 = vsub.s32 1, %v80_v37  ;;  %s469_s11 = smov [#allocation7]  }
  0x32   :  { %v41_v34 = vld [vmem:[#allocation2] sm:$0xff]  ;;  %s298_s12 = sshll.u32 %s469_s11, 4  ;;  %s299_s12 = int_to_ptr.vmem [resolvable:$true] %s298_s12 }
  0x33   :  { %v43_v35 = vpack.c.bf16 %v41_v34, %v41_v34  ;;  %v77_v39 = vld [vmem:[%s538_s2] sm:$0x3]  ;;  %s437_s13 = scalar_lea.vmem %s299_s12, 256  ;;  %p442_p3 = scmp.lt.s32.totalorder %s299_s12, %s299_s12 }
  0x34   :  { %256 = vmatpush1.bf16.msra.mxu0 %v356_v7  ;;  %v82_v41 = vrot.slane %v77_v39, %v81_v38  ;;  %v86_v42 = vrot.slane %v77_v39, %v85_v40  ;;  %p438_p2 = scmp.ne.s32.totalorder %s299_s12, %s437_s13  ;;  %p443_p4 = scmp.lt.s32.totalorder %s437_s13, %s437_s13 }
  0x35   :  { %257 = vmatprep.subr.bf16.mxu0 %v357_v8 }
  0x36   :  { %p444_p5 = por %p443_p4, %p442_p3 }
  0x38   :  { %258 = vmatpush1.bf16.msra.mxu0 %v359_v9  ;;  %p445_p6 = pnand %p444_p5, %p438_p2 }
  0x39   :  { %259 = vmatprep.subr.bf16.mxu0 %v360_v10 }
  0x3c   :  { %260 = vmatpush1.bf16.msra.mxu0 %v362_v11 }
  0x3d   :  { %261 = vmatprep.subr.bf16.mxu0 %v363_v12 }
  0x40   :  { %262 = vmatpush1.bf16.msra.mxu0 %v365_v15 }
  0x41   :  { %263 = vmatprep.subr.bf16.mxu0 %v366_v16 }
  0x44   :  { %264 = vmatpush1.bf16.msra.mxu0 %v368_v17 }
  0x45   :  { %265 = vmatprep.subr.bf16.mxu0 %v369_v18 }
  0x48   :  { %266 = vmatpush1.bf16.msra.mxu0 %v371_v19 }
  0x49   :  { %267 = vmatprep.subr.bf16.mxu0 %v372_v20 }
  0x4c   :  { %268 = vmatpush1.bf16.msra.mxu0 %v374_v21 }
  0x4d   :  { %269 = vmatprep.subr.bf16.mxu0 %v375_v22 }
  0x50   :  { %270 = vmatpush1.bf16.msra.mxu0 %v377_v23 }
  0x51   :  { %271 = vmatprep.subr.bf16.mxu0 %v378_v24 }
  0x54   :  { %272 = vmatpush1.bf16.msra.mxu0 %v380_v25 }
  0x55   :  { %273 = vmatprep.subr.bf16.mxu0 %v381_v26 }
  0x58   :  { %274 = vmatpush1.bf16.msra.mxu0 %v383_v27 }
  0x59   :  { %275 = vmatprep.subr.bf16.mxu0 %v384_v28 }
  0x5c   :  { %276 = vmatpush1.bf16.msra.mxu0 %v386_v29 }
  0x5d   :  { %277 = vmatprep.subr.bf16.mxu0 %v387_v30 }
  0x60   :  { %278 = vmatpush1.bf16.msra.mxu0 %v389_v31 }
  0x61   :  { %279 = vmatprep.subr.bf16.mxu0 %v390_v32 }
  0x64   :  { %280 = vmatpush1.bf16.msra.mxu0 %v392_v33 }
  0x67   :  { %282 = vmatmul.mubr.bf16.vlgmr.msra.gmra.mrb[0].mxu0 %v43_v35 }
 0x13a   :  { %v283_v43 = vpop.f32.mrb[0].mxu0 }
 0x13b   :  { %v284_v44 = vadd.f32 %v283_v43, %v82_v41  ;;  %v285_v45 = vpop.f32.mrb[1].mxu0 }
 0x13c   :  { %v286_v46 = vadd.f32 %v285_v45, %v86_v42  ;;  %v287_v47 = vpop.f32.mrb[2].mxu0 }
 0x13d   :  { %290 = vst [vmem:[#allocation7] sm:$0xff] %v284_v44  ;;  %v288_v48 = vpop.f32.mrb[3].mxu0 }
 0x13e   :  { %291 = vst [vmem:[#allocation7 + $0x8] sm:$0xff] %v286_v46 }
 0x13f   :  { %448 = shalt.err (!%p445_p6)
}
 0x140   :  { %s449_s15 = scalar_lea.hbm %s539_s3, 256 }
 0x141   :  { %p450_p7 = scmp.ne.s32.totalorder %s539_s3, %s449_s15  ;;  %p453_p8 = scmp.lt.u32.totalorder %s449_s15, %s539_s3 }
 0x143   :  { %p455_p9 = pnand %p453_p8, %p450_p7 }
 0x145   :  { %458 = shalt.err (!%p455_p9)
}
 0x146   :  { %301 = dma.vmem_to_hbm [thread:$0]  %s299_s12, 256, %s539_s3, [#allocation4]  }
 0x147   :  { %463 = dma.done.wait [#allocation4], 256  }
 0x148   :  { %464 = vsyncadd [#allocation4], 4294967040 }
 0x149   :  { %305 = vsyncpa [#allocation3], 1 }
 0x14a   :  { %306 = vsyncpa [#allocation6], 1 }
 0x14b   :  { %307 = vsyncpa [#allocation4], 1 }

</bundles_post_ra>
